<compile_context>
chip_gen: v6e
topology: v6e:2x2x1
jax: 0.10.0
libtpu: 0.0.40
codegen_flags: <defaults>
</compile_context>

<pallas_src>
import functools

import jax
import jax.numpy as jnp
from jax.experimental import pallas as pl
from jax.experimental.pallas import tpu as pltpu


_VMEM_LIMIT = 64 * 1024 * 1024


def _round_up(x, m):
    return ((x + m - 1) // m) * m


# -----------------------------------------------------------------------------
# in-kernel elementwise helpers
# -----------------------------------------------------------------------------
def _gelu(x):
    # tanh-approx GELU: one tanh on the (otherwise idle) EUP slot instead of a
    # ~12-VALU-op erf polynomial.  (PyTorch nn.GELU default is exact-erf; the
    # approximation error ~1e-3 is acceptable for inference.)
    c = 0.7978845608028654  # sqrt(2/pi)
    return 0.5 * x * (1.0 + jnp.tanh(c * (x + 0.044715 * x * x * x)))


# -----------------------------------------------------------------------------
# Pallas kernels
# -----------------------------------------------------------------------------
def mlp2_kernel(x_ref, w1_ref, b1_ref, w2_ref, b2_ref, o_ref, *, act1, act2):
    """Fused 2-layer (Linear+foldedBN[+GELU]) stack; weights resident in VMEM."""
    h = jnp.dot(x_ref[...], w1_ref[...],
                preferred_element_type=jnp.float32) + b1_ref[...]
    if act1:
        h = _gelu(h)
    z = jnp.dot(h, w2_ref[...],
                preferred_element_type=jnp.float32) + b2_ref[...]
    if act2:
        z = _gelu(z)
    o_ref[...] = z.astype(o_ref.dtype)


def mlp2_lsm_kernel(x_ref, w1_ref, b1_ref, w2_ref, b2_ref, o_ref, lsm_ref,
                    *, act1, n_valid):
    """Final classifier: fused 2-layer MLP + masked log-softmax over the first
    n_valid (real) output lanes of the 128-padded head."""
    h = jnp.dot(x_ref[...], w1_ref[...],
                preferred_element_type=jnp.float32) + b1_ref[...]
    if act1:
        h = _gelu(h)
    z = jnp.dot(h, w2_ref[...],
                preferred_element_type=jnp.float32) + b2_ref[...]
    o_ref[...] = z.astype(o_ref.dtype)

    lane = jax.lax.broadcasted_iota(jnp.int32, z.shape, 1)
    valid = lane < n_valid
    m = jnp.max(jnp.where(valid, z, -jnp.inf), axis=-1, keepdims=True)
    e = jnp.where(valid, jnp.exp(z - m), 0.0)
    lse = jnp.log(jnp.sum(e, axis=-1, keepdims=True))
    lsm_ref[...] = (z - m - lse).astype(lsm_ref.dtype)


def pdist2_kernel(t_ref, s_ref, o_ref):
    """Pairwise squared distances via |t|^2 + |s|^2 - 2 t@s (cross term on MXU).
    t: (1, tn, 8)  s: (1, 8, M)  ->  (1, tn, M).  Coords zero-padded 3->8."""
    t = t_ref[0]                                    # (tn, 8)
    s = s_ref[0]                                    # (8, M)
    cross = jnp.dot(t, s, preferred_element_type=jnp.float32)   # (tn, M)
    t2 = jnp.sum(t * t, axis=1, keepdims=True)      # (tn, 1)
    s2 = jnp.sum(s * s, axis=0, keepdims=True)      # (1, M)
    o_ref[0] = jnp.maximum(t2 + s2 - 2.0 * cross, 0.0)


def three_interp_kernel(idx_smem, w_ref, feats_ref, o_ref):
    """three_interpolate as a gather: for each output row, 3 dynamic row loads
    from the (M, C) source-feature block + weighted FMA.  Indices live in SMEM
    (scalar prefetch); weights are a (1, tp, 3) VMEM tile."""
    b = pl.program_id(0)
    j = pl.program_id(1)
    tp = o_ref.shape[1]
    base = (b * pl.num_programs(1) + j) * (tp * 3)

    def body(r, carry):
        i0 = idx_smem[base + 3 * r]
        i1 = idx_smem[base + 3 * r + 1]
        i2 = idx_smem[base + 3 * r + 2]
        w = w_ref[0, pl.ds(r, 1), :]                # (1, 3)
        row = (feats_ref[0, pl.ds(i0, 1), :] * w[:, 0:1]
               + feats_ref[0, pl.ds(i1, 1), :] * w[:, 1:2]
               + feats_ref[0, pl.ds(i2, 1), :] * w[:, 2:3])
        o_ref[0, pl.ds(r, 1), :] = row
        return carry

    jax.lax.fori_loop(0, tp, body, 0)


# -----------------------------------------------------------------------------
# pallas_call wrappers
# -----------------------------------------------------------------------------
def fused_mlp2(x, l1, l2, with_logsoftmax=False):
    """x: (rows, K).  Applies layer1 (BN folded, optional GELU) then layer2.
    Output lanes padded to a multiple of 128 (lane-dense stores) and sliced."""
    m, k = x.shape
    h = l1['w'].shape[1]
    n = l2['w'].shape[1]
    n_pad = _round_up(n, 128)
    tm = min(512, _round_up(m, 8))
    m_pad = _round_up(m, tm)

    x_p = x if m_pad == m else jnp.pad(x, ((0, m_pad - m), (0, 0)))
    w2 = l2['w'] if n_pad == n else jnp.pad(l2['w'], ((0, 0), (0, n_pad - n)))
    b2 = l2['b'] if n_pad == n else jnp.pad(l2['b'], ((0, 0), (0, n_pad - n)))

    in_specs = [
        pl.BlockSpec((tm, k), lambda i: (i, 0)),
        pl.BlockSpec((k, h), lambda i: (0, 0)),       # resident weights
        pl.BlockSpec((1, h), lambda i: (0, 0)),
        pl.BlockSpec((h, n_pad), lambda i: (0, 0)),
        pl.BlockSpec((1, n_pad), lambda i: (0, 0)),
    ]
    cp = pltpu.CompilerParams(dimension_semantics=("parallel",),
                              vmem_limit_bytes=_VMEM_LIMIT)
    grid = (m_pad // tm,)

    if with_logsoftmax:
        preds, lsm = pl.pallas_call(
            functools.partial(mlp2_lsm_kernel, act1=l1['act'], n_valid=n),
            out_shape=(jax.ShapeDtypeStruct((m_pad, n_pad), jnp.float32),
                       jax.ShapeDtypeStruct((m_pad, n_pad), jnp.float32)),
            grid=grid,
            in_specs=in_specs,
            out_specs=(pl.BlockSpec((tm, n_pad), lambda i: (i, 0)),
                       pl.BlockSpec((tm, n_pad), lambda i: (i, 0))),
            compiler_params=cp,
        )(x_p, l1['w'], l1['b'], w2, b2)
        return preds[:m, :n], lsm[:m, :n]

    out = pl.pallas_call(
        functools.partial(mlp2_kernel, act1=l1['act'], act2=l2['act']),
        out_shape=jax.ShapeDtypeStruct((m_pad, n_pad), jnp.float32),
        grid=grid,
        in_specs=in_specs,
        out_specs=pl.BlockSpec((tm, n_pad), lambda i: (i, 0)),
        compiler_params=cp,
    )(x_p, l1['w'], l1['b'], w2, b2)
    return out[:m, :n]


def pairwise_sqdist(t, s):
    """t: (B, N, 3) targets, s: (B, 3, M) sources -> (B, N, M) squared dists."""
    bsz, n, _ = t.shape
    _, _, m = s.shape
    tn = min(256, _round_up(n, 8))
    n_pad = _round_up(n, tn)
    # pad target rows to the tile and xyz 3 -> 8 so the MXU contraction is aligned
    t_p = jnp.pad(t, ((0, 0), (0, n_pad - n), (0, 5)))
    s_p = jnp.pad(s, ((0, 0), (0, 5), (0, 0)))
    out = pl.pallas_call(
        pdist2_kernel,
        out_shape=jax.ShapeDtypeStruct((bsz, n_pad, m), jnp.float32),
        grid=(bsz, n_pad // tn),
        in_specs=[pl.BlockSpec((1, tn, 8), lambda b, i: (b, i, 0)),
                  pl.BlockSpec((1, 8, m), lambda b, i: (b, 0, 0))],
        out_specs=pl.BlockSpec((1, tn, m), lambda b, i: (b, i, 0)),
        compiler_params=pltpu.CompilerParams(
            dimension_semantics=("parallel", "parallel"),
            vmem_limit_bytes=_VMEM_LIMIT),
    )(t_p, s_p)
    return out[:, :n, :]


def three_interpolate(feats_t, idx, weight):
    """feats_t: (B, M, C) token-layout source features, idx/weight: (B, P, 3)
    -> (B, P, C) weighted 3-NN interpolation (gather kernel, no dense matmul)."""
    bsz, m, c = feats_t.shape
    _, p, _ = idx.shape
    tp = min(256, _round_up(p, 8))
    p_pad = _round_up(p, tp)
    if p_pad != p:
        idx = jnp.pad(idx, ((0, 0), (0, p_pad - p), (0, 0)))
        weight = jnp.pad(weight, ((0, 0), (0, p_pad - p), (0, 0)))
    idx_flat = idx.astype(jnp.int32).reshape(-1)

    out = pl.pallas_call(
        three_interp_kernel,
        out_shape=jax.ShapeDtypeStruct((bsz, p_pad, c), jnp.float32),
        grid_spec=pltpu.PrefetchScalarGridSpec(
            num_scalar_prefetch=1,
            grid=(bsz, p_pad // tp),
            in_specs=[pl.BlockSpec((1, tp, 3), lambda b, j, idx_ref: (b, j, 0)),
                      pl.BlockSpec((1, m, c), lambda b, j, idx_ref: (b, 0, 0))],
            out_specs=pl.BlockSpec((1, tp, c), lambda b, j, idx_ref: (b, j, 0)),
        ),
        compiler_params=pltpu.CompilerParams(
            dimension_semantics=("parallel", "parallel"),
            vmem_limit_bytes=_VMEM_LIMIT),
    )(idx_flat, weight.astype(jnp.float32), feats_t.astype(jnp.float32))
    return out[:, :p, :]


# -----------------------------------------------------------------------------
# parameter construction (mirrors nn.Module __init__; BN folded at build time)
# -----------------------------------------------------------------------------
def init_linear(key, c_in, c_out, bn, act):
    kw, kb = jax.random.split(key)
    w = jax.random.normal(kw, (c_in, c_out), jnp.float32) / (float(c_in) ** 0.5)
    b = jax.random.normal(kb, (1, c_out), jnp.float32) * 0.02
    if bn:
        # fresh BatchNorm1d running stats (inference) folded into w, b
        eps = 1e-5
        gamma = jnp.ones((1, c_out), jnp.float32)
        beta = jnp.zeros((1, c_out), jnp.float32)
        rmean = jnp.zeros((1, c_out), jnp.float32)
        rvar = jnp.ones((1, c_out), jnp.float32)
        scale = gamma / jnp.sqrt(rvar + eps)
        shift = beta - rmean * scale
        w = w * scale
        b = b * scale + shift
    return {'w': w, 'b': b, 'act': bool(act)}


def build_classifier(key, in_ch, channels, layer_type):
    # 'LBAD' = Linear+BN+GELU+Dropout (dropout == identity at inference),
    # 'LBA'  = Linear+BN+GELU,  'L' = Linear only.
    assert len(channels) == len(layer_type)
    layers = []
    for c, lt in zip(channels, layer_type):
        key, sub = jax.random.split(key)
        has_bn_act = lt in ('LBA', 'LBAD')
        layers.append(init_linear(sub, in_ch, c, bn=has_bn_act, act=has_bn_act))
        in_ch = c
    return layers


def init_params(key, channels, num_stage, num_cls, num_query_cls):
    keys = jax.random.split(key, 4)
    mlp = []
    kk = keys[0]
    for _ in range(num_stage):
        kk, k1, k2 = jax.random.split(kk, 3)
        # Sequential(Conv1d(C//S -> C, 1)+BN+GELU, Conv1d(C -> C, 1)+BN+GELU)
        mlp.append([init_linear(k1, channels // num_stage, channels, True, True),
                    init_linear(k2, channels, channels, True, True)])
    return {
        'num_stage': num_stage,
        'mlp': mlp,
        'query_classifier': build_classifier(keys[1], channels,
                                             [channels, num_query_cls],
                                             ['LBAD', 'L']),
        'points_classifier': build_classifier(keys[2], channels,
                                              [channels, num_cls],
                                              ['LBAD', 'L']),
        'classifier': build_classifier(keys[3], channels,
                                       [channels, num_cls],
                                       ['LBAD', 'L']),
    }


# -----------------------------------------------------------------------------
# forward pass
# -----------------------------------------------------------------------------
def qfp(points_feats, query_feats):
    # TODO(synk): QFP is an externally-built MODULES config (query feature
    # propagation) with no definition in this file — modeled as identity.
    del query_feats
    return points_feats


def query_seg_head_forward(input_dict, params):
    original_points = input_dict['original_points']   # (B, 3, P)
    points = input_dict['points']                     # (B, 3, M)
    points_index = input_dict['points_index']
    query = input_dict['query']                       # (B, 3, Q)
    query_feats = input_dict['query_feats']           # (B, C, Q)
    points_feats = input_dict['points_feats']         # (B, C, M)
    points_feats_list = input_dict['points_feats_list']

    bsz, c, num_query = query_feats.shape
    _, _, num_feats = points_feats.shape
    _, _, num_points = original_points.shape
    preds_dict = {}

    qc = params['query_classifier']
    pc = params['points_classifier']
    fc = params['classifier']

    # ----- query classifier branch (knn(1, original_points, query)) ----------
    d2_q = pairwise_sqdist(jnp.transpose(query, (0, 2, 1)),
                           original_points[:, :3, :])           # (B, Q, P)
    query_index = jnp.argmin(d2_q, axis=-1).astype(jnp.int32)    # (B, Q)
    qf_flat = jnp.transpose(query_feats, (0, 2, 1)).reshape(bsz * num_query, c)
    query_preds = fused_mlp2(qf_flat, qc[0], qc[1]).reshape(bsz, num_query, -1)
    preds_dict['query'] = {'preds': query_preds, 'index': query_index}

    # ----- QFP + points classifier --------------------------------------------
    points_feats = qfp(points_feats, query_feats)
    pf_token = jnp.transpose(points_feats, (0, 2, 1))            # (B, M, C)
    pf_flat = pf_token.reshape(bsz * num_feats, c)
    points_preds = fused_mlp2(pf_flat, pc[0], pc[1]).reshape(bsz, num_feats, -1)
    preds_dict['points'] = {'preds': points_preds, 'index': points_index}

    # ----- three_nn (brute-force dists in Pallas, top-3 selection in JAX) ------
    d2 = pairwise_sqdist(jnp.transpose(original_points[:, :3, :], (0, 2, 1)),
                         points)                                 # (B, P, M)
    neg_vals, interp_idx = jax.lax.top_k(-d2, 3)                 # 3 nearest
    dist = jnp.sqrt(jnp.maximum(-neg_vals, 0.0))                 # three_nn returns sqrt dists
    dist_recip = 1.0 / (dist + 1e-8)
    norm = jnp.sum(dist_recip, axis=2, keepdims=True)
    interp_w = dist_recip / norm                                 # (B, P, 3)
    interp_idx = interp_idx.astype(jnp.int32)

    # ----- three_interpolate (gather kernel, no dense (B,P,M) weight matrix) ---
    interpolated_feats = three_interpolate(pf_token, interp_idx, interp_w)  # (B, P, C)

    num_stage = params['num_stage']
    for i in range(num_stage - 1, -1, -1):
        src_token = jnp.transpose(points_feats_list[i], (0, 2, 1))  # (B, M, C//S)
        tmp = three_interpolate(src_token, interp_idx, interp_w)    # (B, P, C//S)
        tmp_flat = tmp.reshape(bsz * num_points, -1)
        l1, l2 = params['mlp'][i]
        tmp_flat = fused_mlp2(tmp_flat, l1, l2)                     # fused 2x(1x1 conv)
        interpolated_feats = tmp_flat.reshape(bsz, num_points, c) + interpolated_feats

    # ----- final classifier + fused log-softmax --------------------------------
    feats_flat = interpolated_feats.reshape(bsz * num_points, c)
    preds_flat, lsm_flat = fused_mlp2(feats_flat, fc[0], fc[1], with_logsoftmax=True)
    preds = preds_flat.reshape(bsz, num_points, -1)
    preds_logits = lsm_flat.reshape(bsz, num_points, -1)
    preds_dict['preds'] = {'preds': preds, 'preds_logits': preds_logits}
    return preds_dict


# -----------------------------------------------------------------------------
if __name__ == "__main__":
    B, C, NUM_STAGE = 2, 32, 2
    NUM_POINTS, NUM_FEATS, NUM_QUERY = 64, 16, 8
    NUM_CLS, NUM_QUERY_CLS = 5, 3

    key = jax.random.PRNGKey(0)
    ks = jax.random.split(key, 12)
    inputs = {
        'original_points': jax.random.normal(ks[0], (B, 3, NUM_POINTS), jnp.float32),
        'points': jax.random.normal(ks[1], (B, 3, NUM_FEATS), jnp.float32),
        'points_index': jnp.arange(B * NUM_FEATS, dtype=jnp.int32).reshape(B, NUM_FEATS),
        'query': jax.random.normal(ks[2], (B, 3, NUM_QUERY), jnp.float32),
        'query_feats': jax.random.normal(ks[3], (B, C, NUM_QUERY), jnp.float32),
        'points_feats': jax.random.normal(ks[4], (B, C, NUM_FEATS), jnp.float32),
        'points_feats_list': [
            jax.random.normal(ks[5 + i], (B, C // NUM_STAGE, NUM_FEATS), jnp.float32)
            for i in range(NUM_STAGE)
        ],
    }
    params = init_params(ks[10], C, NUM_STAGE, NUM_CLS, NUM_QUERY_CLS)

    out = query_seg_head_forward(inputs, params)
    jax.tree_util.tree_map(jax.block_until_ready, out)

    # sanity on output shapes / values
    assert out['query']['preds'].shape == (B, NUM_QUERY, NUM_QUERY_CLS)
    assert out['query']['index'].shape == (B, NUM_QUERY)
    assert out['points']['preds'].shape == (B, NUM_FEATS, NUM_CLS)
    assert out['preds']['preds'].shape == (B, NUM_POINTS, NUM_CLS)
    assert out['preds']['preds_logits'].shape == (B, NUM_POINTS, NUM_CLS)
    assert bool(jnp.all(jnp.isfinite(out['preds']['preds_logits'])))
    print("KERNEL_OK")
</pallas_src>

<mosaic_0001>
module attributes {stable_mosaic.version = 11 : i64} {
  func.func @pdist2_kernel(%arg0: i32, %arg1: i32, %arg2: memref<1x8x8xf32, #tpu.memory_space<vmem>>, %arg3: memref<1x8x64xf32, #tpu.memory_space<vmem>>, %arg4: memref<1x8x64xf32, #tpu.memory_space<vmem>>) attributes {dimension_semantics = [#tpu.dimension_semantics<parallel>, #tpu.dimension_semantics<parallel>], iteration_bounds = array<i64: 2, 1>, scalar_prefetch = 0 : i64, scratch_operands = 0 : i64, tpu.core_type = #tpu.core_type<tc>, window_params = [{transform_indices = @transform_0, window_bounds = array<i64: 1, 8, 8>}, {transform_indices = @transform_1, window_bounds = array<i64: 1, 8, 64>}, {transform_indices = @transform_2, window_bounds = array<i64: 1, 8, 64>}]} {
    %c0 = arith.constant 0 : index
    %c0_0 = arith.constant 0 : index
    %c0_1 = arith.constant 0 : index
    %0 = vector.load %arg2[%c0, %c0_0, %c0_1] : memref<1x8x8xf32, #tpu.memory_space<vmem>>, vector<1x8x8xf32>
    %1 = vector.shape_cast %0 : vector<1x8x8xf32> to vector<8x8xf32>
    %c0_2 = arith.constant 0 : index
    %c0_3 = arith.constant 0 : index
    %c0_4 = arith.constant 0 : index
    %2 = vector.load %arg3[%c0_2, %c0_3, %c0_4] : memref<1x8x64xf32, #tpu.memory_space<vmem>>, vector<1x8x64xf32>
    %3 = vector.shape_cast %2 : vector<1x8x64xf32> to vector<8x64xf32>
    %cst = arith.constant dense<0.000000e+00> : vector<8x64xf32>
    %4 = tpu.matmul %1, %3, %cst {dimension_numbers = #tpu.dot_dimension_numbers<[1], [0], [0], [1], [0, 0, 1, 1], [], []>} : vector<8x8xf32>, vector<8x64xf32>, vector<8x64xf32> -> vector<8x64xf32>
    %5 = arith.mulf %1, %1 : vector<8x8xf32>
    %cst_5 = arith.constant dense<0.000000e+00> : vector<8xf32>
    %6 = vector.multi_reduction <add>, %5, %cst_5 [1] : vector<8x8xf32> to vector<8xf32>
    %7 = vector.shape_cast %6 : vector<8xf32> to vector<8x1xf32>
    %8 = arith.mulf %3, %3 : vector<8x64xf32>
    %cst_6 = arith.constant dense<0.000000e+00> : vector<64xf32>
    %9 = vector.multi_reduction <add>, %8, %cst_6 [0] : vector<8x64xf32> to vector<64xf32>
    %10 = vector.shape_cast %9 : vector<64xf32> to vector<1x64xf32>
    %11 = vector.broadcast %7 : vector<8x1xf32> to vector<8x64xf32>
    %12 = vector.broadcast %10 : vector<1x64xf32> to vector<8x64xf32>
    %13 = arith.addf %11, %12 : vector<8x64xf32>
    %cst_7 = arith.constant 2.000000e+00 : f32
    %14 = vector.broadcast %cst_7 : f32 to vector<8x64xf32>
    %15 = arith.mulf %14, %4 : vector<8x64xf32>
    %16 = arith.subf %13, %15 : vector<8x64xf32>
    %cst_8 = arith.constant 0.000000e+00 : f32
    %17 = vector.broadcast %cst_8 : f32 to vector<8x64xf32>
    %18 = arith.maximumf %16, %17 : vector<8x64xf32>
    %c0_9 = arith.constant 0 : index
    %c0_10 = arith.constant 0 : index
    %c0_11 = arith.constant 0 : index
    %19 = vector.load %arg4[%c0_9, %c0_10, %c0_11] : memref<1x8x64xf32, #tpu.memory_space<vmem>>, vector<1x8x64xf32>
    %20 = vector.shape_cast %19 : vector<1x8x64xf32> to vector<8x64xf32>
    %21 = vector.shape_cast %18 : vector<8x64xf32> to vector<1x8x64xf32>
    tpu.vector_store %arg4[%c0_9, %c0_10, %c0_11], %21 {strides = array<i32>} : memref<1x8x64xf32, #tpu.memory_space<vmem>>, vector<1x8x64xf32>,
    return
  }
  func.func @transform_0(%arg0: i32, %arg1: i32) -> (i32, i32, i32) {
    %c0_i32 = arith.constant 0 : i32
    %c0_i32_0 = arith.constant 0 : i32
    return %arg0, %arg1, %c0_i32 : i32, i32, i32
  }
  func.func @transform_1(%arg0: i32, %arg1: i32) -> (i32, i32, i32) {
    %c0_i32 = arith.constant 0 : i32
    %c0_i32_0 = arith.constant 0 : i32
    %c0_i32_1 = arith.constant 0 : i32
    return %arg0, %c0_i32, %c0_i32_0 : i32, i32, i32
  }
  func.func @transform_2(%arg0: i32, %arg1: i32) -> (i32, i32, i32) {
    %c0_i32 = arith.constant 0 : i32
    %c0_i32_0 = arith.constant 0 : i32
    return %arg0, %arg1, %c0_i32 : i32, i32, i32
  }
}

</mosaic_0001>

<bundles_post_ra>
// kernel: tpu_custom_call.1
= control target key start
LH: loop header
LB: loop body
LE: loop exit
PB: predicated region body
PF: predicated region fallthrough
CT: control target
= control target key end

     0   :  { %7 = vsyncpa [#allocation3], 0  ;;  %s848_s0 = inlined_call_operand.hbm [shape: f32[2,8,8], index: 0, kind: input, shape index: {}]   ;;  %s849_s1 = inlined_call_operand.hbm [shape: f32[2,8,64], index: 1, kind: input, shape index: {}]   ;;  %s850_s2 = inlined_call_operand.hbm [shape: f32[2,8,64], index: 2, kind: output, shape index: {}]  }
   0x1   :  { %9 = vsyncpa [#allocation3 + $0x1], 0 }
   0x2   :  { %10 = vsyncpa [#allocation6], 0 }
   0x3   :  { %12 = vsyncpa [#allocation6 + $0x1], 0 }
   0x4   :  { %13 = vsyncpa [#allocation4], 0 }
   0x5   :  { %15 = vsyncpa [#allocation4 + $0x1], 0  ;;  %s680_s9 = smov 0   ;;  %s682_s10 = smov 0  }
   0x6   :  { %s684_s11 = smov 0   ;;  %s686_s12 = smov 0  }
   0x7   :  { %s688_s13 = smov 0   ;;  %s690_s14 = smov 0  }
   0x8 LB: > { %s425_s15 = sadd.s32 4294967295, %s658_s14   ;;  %s426_s16 = sadd.s32 4294967294, %s658_s14   ;;  %s658_s14 = sphi %s690_s14, %s21_s14   ;;  %s654_s13 = sphi %s688_s13, %s862_s13   ;;  %s650_s12 = sphi %s686_s12, %s861_s12   ;;  %s646_s11 = sphi %s684_s11, %s860_s11   ;;  %s642_s10 = sphi %s682_s10, %s859_s10   ;;  %s638_s9 = sphi %s680_s9, %s858_s9  }
   0x9   : > { %s33_s17 = sadd.s32 1, %s654_s13  ;;  %s42_s18 = sadd.s32 1, %s646_s11 }
   0xa   : > { %p35_p0 = scmp.ge.s32.totalorder %s33_s17, 2  ;;  %p49_p1 = scmp.ne.s32.totalorder %s646_s11, %s642_s10 }
   0xb   : > { %p50_p2 = scmp.eq.s32.totalorder %s658_s14, 0  ;;  %p55_p3 = scmp.ne.s32.totalorder %s642_s10, %s638_s9 }
   0xc   : > { %s864_s17 = smov (%p35_p0, %s33_s17), 0  ;;  %p56_p5 = scmp.eq.s32.totalorder %s425_s15, 0 }
   0xd   : > { %p721_p4 = por %p50_p2, %p49_p1  ;;  %s37_s20 = ssub.s32 %s654_s13, %s864_s17 }
   0xe   : > { %p107_p6 = scmp.eq.s32.totalorder %s425_s15, 1  ;;  %p40_p7 = scmp.eq.s32.totalorder %s37_s20, 0 }
   0xf   : > { %p727_p8 = por %p56_p5, %p55_p3  ;;  %p113_p10 = scmp.eq.s32.totalorder %s426_s16, 1 }
  0x10   : > { %p731_p9 = por %p107_p6, %p49_p1  ;;  %p466_p13 = scmp.lt.s32.totalorder %s658_s14, 2 }
  0x11   : > { %s736_s23 = scalar_select %p40_p7, %s646_s11, %s42_s18  }
  0x12   : > { %p738_p11 = por %p113_p10, %p55_p3  ;;  %s745_s25 = sand.u32 1, %s646_s11  }
  0x13   : > { %s429_s26 = sshll.u32 %s745_s25, 3  ;;  %s430_s27 = sshll.u32 %s654_s13, 7 }
  0x14   : > { %s143_s30 = scalar_lea.hbm %s848_s0, %s430_s27  ;;  %s137_s3 = scalar_lea.vmem [#allocation2], %s429_s26 }
  0x15   : > { %s145_s4 = sshll.u32 %s137_s3, 4  ;;  %p754_p0 = pnand %p466_p13, %p721_p4  ;;  %s146_s4 = int_to_ptr.vmem [resolvable:$true] %s145_s4 }
  0x16   : > { %p433_p1 = scmp.ge.s32.totalorder %s658_s14, 1  ;;  %p168_p2 = scmp.lt.s32.totalorder %s658_s14, 3 }
  0x17   : > { %s134_s6 = scalar_lea.sflag [#allocation3], %s745_s25  ;;  %p520_p3 = pneg %p754_p0 }
  0x18   : > { %s531_s7 = scalar_lea.vmem %s146_s4, 128  ;;  %s660_s8 = smov [#allocation2]  }
  0x19   : > { %p532_p5 = scmp.ne.s32.totalorder %s146_s4, %s531_s7  ;;  %s536_s15 = sshll.u32 %s660_s8, 4  ;;  %s537_s15 = int_to_ptr.vmem [resolvable:$false] %s536_s15 }
  0x1a   : > { %s538_s16 = scalar_lea.vmem %s537_s15, 256  ;;  %p539_p4 = scmp.lt.s32.totalorder %s146_s4, %s537_s15 }
  0x1b   : > { %p534_p6 = pnand %p532_p5, %p520_p3  ;;  %p540_p10 = scmp.lt.s32.totalorder %s538_s16, %s531_s7 }
  0x1d   : > { %p535_p7 = pneg %p534_p6  ;;  %p541_p13 = por %p540_p10, %p539_p4 }
  0x1f   : > { %p542_p12 = pnand %p541_p13, %p535_p7 }
  0x21   : > { %545 = shalt.err (!%p542_p12)
}
  0x22   : > { %458 = dma.hbm_to_vmem [thread:$0]  (!%p754_p0), %s143_s30, 128, %s146_s4, %s134_s6  }
  0x23   : > { %p772_p5 = pnand %p433_p1, %p168_p2  ;;  %s161_s28 = scalar_lea.hbm %s849_s1, %s430_s27 }
  0x24   : > { %s156_s29 = scalar_lea.vmem [#allocation5], %s429_s26  ;;  %s153_s7 = scalar_lea.sflag [#allocation6], %s745_s25 }
  0x25   : > { %s163_s3 = sshll.u32 %s156_s29, 4  ;;  %s661_s30 = smov [#allocation5]   ;;  %s164_s3 = int_to_ptr.vmem [resolvable:$true] %s163_s3 }
  0x26   : > { %s559_s8 = scalar_lea.vmem %s164_s3, 128  ;;  %s564_s4 = sshll.u32 %s661_s30, 4  ;;  %s565_s4 = int_to_ptr.vmem [resolvable:$false] %s564_s4 }
  0x27   : > { %p560_p12 = scmp.ne.s32.totalorder %s164_s3, %s559_s8  ;;  %s566_s6 = scalar_lea.vmem %s565_s4, 256 }
  0x28   : > { %p567_p1 = scmp.lt.s32.totalorder %s164_s3, %s565_s4  ;;  %p568_p2 = scmp.lt.s32.totalorder %s566_s6, %s559_s8 }
  0x29   : > { %p562_p6 = pnand %p560_p12, %p520_p3 }
  0x2a   : > { %p569_p4 = por %p568_p2, %p567_p1 }
  0x2b   : > { %p563_p7 = pneg %p562_p6 }
  0x2d   : > { %p570_p10 = pnand %p569_p4, %p563_p7 }
  0x2f   : > { %573 = shalt.err (!%p570_p10)
}
  0x30   : > { %461 = dma.hbm_to_vmem [thread:$0]  (!%p754_p0), %s161_s28, 128, %s164_s3, %s153_s7  }
  0x31   : > { %172 = sbr.rel (%p772_p5) target bundleno = 272 (0x110), region = 28  ;;  %s788_s25 = sand.u32 (!%p772_p5), 1, %s642_s10  }
  0x32   : > { %s791_s26 = sshll.u32 (!%p772_p5), %s788_s25, 3  ;;  %s175_s27 = scalar_lea.sflag (!%p772_p5), [#allocation3], %s788_s25 }
  0x33   : > { %s178_s15 = scalar_lea.vmem (!%p772_p5), [#allocation2], %s791_s26 }
  0x36   : > { %625 = dma.done.wait (%p727_p8), %s175_s27, 128  }
  0x37   : > { %627 = vsyncadd (%p727_p8), %s175_s27, 4294967168  ;;  %s184_s5 = scalar_lea.sflag [#allocation6], %s788_s25  ;;  %s187_s16 = scalar_lea.vmem [#allocation5], %s791_s26 }
  0x38   : > { %629 = dma.done.wait (%p727_p8), %s184_s5, 128  }
  0x39   : > { %631 = vsyncadd (%p727_p8), %s184_s5, 4294967168  ;;  %v662_v0 = vmov 0.0   ;;  %vm663_vm0 = vmmov 0   ;;  %vm215_vm1 = vcmask 64512   ;;  %v214_v1 = vld [vmem:[%s187_s16] sm:$0xff]  ;;  %v213_v2 = vld [vmem:[%s178_s15] sm:$0xff] }
  0x3a   : > { %444 = vmatprep.subr.mxu0 %v662_v0  ;;  %446 = vmatprep.mubr.msk.f32.mxu0 %vm663_vm0, %v662_v0  ;;  %v289_v3 = vmul.f32 %v213_v2, %v213_v2  ;;  %v293_v5 = vmul.f32 %v214_v1, %v214_v1  ;;  %vm294_vm2 = vcmask 523264   ;;  %s439_s21 = sshll.u32 %s650_s12, 7  ;;  %s212_s18 = scalar_lea.vmem [#allocation7], %s791_s26 }
  0x3b   : > { %445 = vmatpush3.msra.mxu0 %v214_v1  ;;  %s322_s19 = sshll.u32 %s212_s18, 4  ;;  %s320_s29 = scalar_lea.hbm %s850_s2, %s439_s21  ;;  %s323_s19 = int_to_ptr.vmem [resolvable:$true] %s322_s19 }
  0x3c   : > { %447 = vmatmul.mubr.msk.f32.vlgmr.msra.gmra.mxu0 %vm215_vm1, %v213_v2  ;;  %v290_v4 = vsel %vm215_vm1, %v289_v3, 0.0  ;;  %v295_v6 = vsel %vm294_vm2, %v293_v5, 0.0  ;;  %s308_s3 = scalar_lea.sflag [#allocation4], %s788_s25  ;;  %s574_s7 = scalar_lea.vmem %s323_s19, 128 }
  0x3d   : > { %291 = vadd.xlane.f32.xlu0 %v290_v4  ;;  %v296_v7 = vrot.slane %v295_v6, 4  ;;  %p575_p8 = scmp.ne.s32.totalorder %s323_s19, %s574_s7  ;;  %s664_s8 = smov [#allocation7]  }
  0x3e   : > { %s578_s30 = sshll.u32 %s664_s8, 4  ;;  %s579_s30 = int_to_ptr.vmem [resolvable:$false] %s578_s30 }
  0x3f   : > { %v297_v8 = vadd.f32 %v296_v7, %v295_v6  ;;  %p576_p0 = pnand %p575_p8, %p731_p9  ;;  %s580_s12 = scalar_lea.vmem %s579_s30, 256 }
  0x40   : > { %p581_p13 = scmp.lt.s32.totalorder %s323_s19, %s579_s30  ;;  %p582_p5 = scmp.lt.s32.totalorder %s580_s12, %s574_s7 }
  0x41   : > { %v298_v9 = vrot.slane %v297_v8, 2  ;;  %p577_p3 = pneg %p576_p0 }
  0x42   : > { %p583_p12 = por %p582_p5, %p581_p13 }
  0x43   : > { %v299_v10 = vadd.f32 %v298_v9, %v297_v8 }
  0x44   : > { %p584_p6 = pnand %p583_p12, %p577_p3 }
  0x45   : > { %v300_v11 = vrot.slane %v299_v10, 1 }
  0x47   : > { %v301_v12 = vadd.f32 %v300_v11, %v299_v10 }
  0xc6   : > { %v292_v13 = vpop.xlane.xlu0 %291 }
  0xc7   : > { %v302_v14 = vadd.f32 %v301_v12, %v292_v13 }
  0xfc   : > { %v285_v15 = vpop.f32.mrf.mxu0 }
  0xfd   : > { %v303_v16 = vmul.f32 2.0, %v285_v15 }
  0xfe   : > { %v448_v17 = vpop.f32.mrf.mxu0 }
  0xff   : > { %v304_v18 = vsub.f32 %v302_v14, %v303_v16 }
 0x101   : > { %v305_v19 = vmax.f32 %v304_v18, 0.0 }
 0x103   : > { %306 = vst.msk [vmem:[%s212_s18] sm:$0xff] %vm294_vm2, %v305_v19 }
 0x104   : > { %587 = shalt.err (!%p584_p6)
}
 0x105   : > { %s588_s4 = scalar_lea.hbm %s320_s29, 128  ;;  %s592_s26 = scalar_lea.hbm %s850_s2, 256 }
 0x106   : > { %p589_p7 = scmp.ne.s32.totalorder %s320_s29, %s588_s4  ;;  %p593_p4 = scmp.lt.s32.totalorder %s320_s29, %s850_s2 }
 0x107   : > { %p594_p10 = scmp.lt.s32.totalorder %s592_s26, %s588_s4 }
 0x108   : > { %p590_p1 = pnand %p589_p7, %p731_p9 }
 0x109   : > { %p595_p8 = por %p594_p10, %p593_p4 }
 0x10a   : > { %p591_p2 = pneg %p590_p1 }
 0x10c   : > { %p596_p0 = pnand %p595_p8, %p591_p2 }
 0x10e   : > { %599 = shalt.err (!%p596_p0)
}
 0x10f   : > { %453 = dma.vmem_to_hbm [thread:$0]  (%p731_p9), %s323_s19, 128, %s320_s29, %s308_s3  }
 0x110 PF: > { %s334_s5 = sand.u32 1, %s638_s9   ;;  %p857_p3 = scmp.ge.s32.totalorder %s658_s14, 2 }
 0x111   : > { %s335_s16 = scalar_lea.sflag [#allocation4], %s334_s5 }
 0x112   : > { %p463_p13 = pnand %p857_p3, %p738_p11 }
 0x114   : > { %p464_p5 = pneg %p463_p13 }
 0x116   : > { %633 = dma.done.wait (%p464_p5), %s335_s16, 128  }
 0x117   : > { %635 = vsyncadd (%p464_p5), %s335_s16, 4294967168  ;;  %s21_s14 = sadd.s32 1, %s658_s14   ;;  %s858_s9 = smov %s642_s10 }
 0x118   : > { %p18_p12 = scmp.ge.s32.totalorder %s21_s14, 4   ;;  %s859_s10 = smov %s646_s11 }
 0x119   : > { %s860_s11 = smov %s736_s23  ;;  %s861_s12 = smov %s654_s13 }
 0x11a   : > { %s862_s13 = smov %s864_s17  ;;  %20 = sbr.rel (!%p18_p12) target bundleno = 8 (0x8), region = 86 }
 0x11f   :  { %340 = vsyncpa [#allocation3], 1 }
 0x120   :  { %342 = vsyncpa [#allocation3 + $0x1], 1 }
 0x121   :  { %343 = vsyncpa [#allocation6], 1 }
 0x122   :  { %345 = vsyncpa [#allocation6 + $0x1], 1 }
 0x123   :  { %346 = vsyncpa [#allocation4], 1 }
 0x124   :  { %348 = vsyncpa [#allocation4 + $0x1], 1 }

</bundles_post_ra>
